<compile_context>
chip_gen: v5e
topology: v5e:2x2
jax: 0.10.0
libtpu: 0.0.40
codegen_flags: <defaults>
</compile_context>

<pallas_src>
import functools

import jax
import jax.numpy as jnp
from jax.experimental import pallas as pl
from jax.experimental.pallas import tpu as pltpu

# ----------------------------- configuration ------------------------------
BATCH = 2
SEQ = 8          # n (tokens)
DIM = 32         # model dim
HEADS = 4
HEAD_SIZE = 8
HIDDEN = HEADS * HEAD_SIZE   # 32
SCALE = HEAD_SIZE ** (-0.5)
LN_EPS = 1e-5


# ------------------------------- kernel -----------------------------------
def _linear_attn_kernel(x_ref, wq_ref, wk_ref, wv_ref, wout_ref, gamma_ref, bd_ref,
                        o_ref, *, batch, seq, scale):
    """Whole batch in one grid step. x_ref is the flattened (B*N, D) token slab."""
    x = x_ref[...]                                                     # (B*N, D) f32

    # Projections for all tokens at once (MXU, f32 accumulation). Splitting the
    # qkv weight in the wrapper avoids all sub-128 lane slicing in the kernel.
    q_all = jnp.dot(x, wq_ref[...], preferred_element_type=jnp.float32)   # (B*N, H)
    k_all = jnp.dot(x, wk_ref[...], preferred_element_type=jnp.float32)   # (B*N, H)
    v_all = jnp.dot(x, wv_ref[...], preferred_element_type=jnp.float32)   # (B*N, H)

    bd = bd_ref[...]                 # (H, H) block-diagonal ones (same-head mask)
    bd_scaled = bd * scale           # fold q-scale into the context mask (once)

    outs = []
    for b in range(batch):           # static, tiny (B=2); rows are sublane slices
        lo = b * seq
        q = q_all[lo:lo + seq, :]    # (N, H)
        k = k_all[lo:lo + seq, :]
        v = v_all[lo:lo + seq, :]

        # q-softmax per head over the feature dim. Subtracting the row-wide max
        # (constant across all lanes, hence constant within each head) is exact.
        q_max = jnp.max(q, axis=-1, keepdims=True)
        q_exp = jnp.exp(q - q_max)
        # Per-head denominators for every lane with a single matmul vs the
        # block-diagonal ones matrix.
        q_den = jnp.dot(q_exp, bd, preferred_element_type=jnp.float32)      # (N, H)
        q_sm = q_exp / q_den                       # exact divide (correctness)

        # k-softmax over the token dim (per column; per-head independence is free).
        k_max = jnp.max(k, axis=0, keepdims=True)
        k_exp = jnp.exp(k - k_max)
        k_den = jnp.sum(k_exp, axis=0, keepdims=True)
        k_sm = k_exp / k_den                       # exact divide (correctness)

        # All-heads context in one (H, H) matmul (contract over tokens), then mask
        # off-block-diagonal entries and apply the q scale in the same multiply.
        ctx = jax.lax.dot_general(k_sm, v, (((0,), (0,)), ((), ())),
                                  preferred_element_type=jnp.float32)       # (H, H)
        ctx = ctx * bd_scaled

        # out = q_sm @ masked_context : one (N, H) @ (H, H) matmul for all heads.
        outs.append(jnp.dot(q_sm, ctx, preferred_element_type=jnp.float32)) # (N, H)

    out = jnp.concatenate(outs, axis=0)                                     # (B*N, H)

    # Output projection (no bias) + GammaLayerNorm (beta == 0). Dropout: eval no-op.
    y = jnp.dot(out, wout_ref[...], preferred_element_type=jnp.float32)     # (B*N, D)
    d = y.shape[-1]
    mean = jnp.sum(y, axis=-1, keepdims=True) * (1.0 / d)
    cen = y - mean
    var = jnp.sum(cen * cen, axis=-1, keepdims=True) * (1.0 / d)
    y = cen * jax.lax.rsqrt(var + LN_EPS) * gamma_ref[...]

    o_ref[...] = y.astype(o_ref.dtype)


# ------------------------------- wrapper -----------------------------------
def linear_attention_block(x, w_qkv, w_out, gamma):
    """x: (B, N, D) f32; w_qkv: (D, 3*HIDDEN); w_out: (HIDDEN, D); gamma: (D,)."""
    B, N, D = x.shape
    BN = B * N

    x2d = x.reshape(BN, D)
    # Split the fused qkv weight outside the kernel -> no lane slicing in-kernel.
    w_q = w_qkv[:, :HIDDEN]
    w_k = w_qkv[:, HIDDEN:2 * HIDDEN]
    w_v = w_qkv[:, 2 * HIDDEN:3 * HIDDEN]
    gamma2d = gamma.reshape(1, D)
    # Block-diagonal "same head" ones mask, (HIDDEN, HIDDEN).
    lane = jnp.arange(HIDDEN) // HEAD_SIZE
    bd = (lane[:, None] == lane[None, :]).astype(jnp.float32)

    kernel = functools.partial(
        _linear_attn_kernel, batch=B, seq=N, scale=SCALE)

    cost = pl.CostEstimate(
        flops=240_000,
        transcendentals=2_000,
        bytes_accessed=4 * (BN * D + 3 * D * HIDDEN + HIDDEN * D
                            + D + HIDDEN * HIDDEN + BN * D),
    )

    y2d = pl.pallas_call(
        kernel,
        out_shape=jax.ShapeDtypeStruct((BN, D), x.dtype),
        grid_spec=pltpu.PrefetchScalarGridSpec(
            num_scalar_prefetch=0,
            grid=(1,),                                   # single step: whole batch
            in_specs=[
                pl.BlockSpec((BN, D), lambda i: (0, 0)),             # x slab
                pl.BlockSpec((D, HIDDEN), lambda i: (0, 0)),         # w_q
                pl.BlockSpec((D, HIDDEN), lambda i: (0, 0)),         # w_k
                pl.BlockSpec((D, HIDDEN), lambda i: (0, 0)),         # w_v
                pl.BlockSpec((HIDDEN, D), lambda i: (0, 0)),         # w_out
                pl.BlockSpec((1, D), lambda i: (0, 0)),              # gamma
                pl.BlockSpec((HIDDEN, HIDDEN), lambda i: (0, 0)),    # block-diag mask
            ],
            out_specs=pl.BlockSpec((BN, D), lambda i: (0, 0)),
        ),
        compiler_params=pltpu.CompilerParams(
            dimension_semantics=("arbitrary",)),          # keep on one TC
        cost_estimate=cost,
    )(x2d, w_q, w_k, w_v, w_out, gamma2d, bd)

    return y2d.reshape(B, N, D)


# ---------------------------- pure-JAX reference ----------------------------
def _reference(x, w_qkv, w_out, gamma):
    B, N, D = x.shape
    hp = jax.lax.Precision.HIGHEST
    qkv = jnp.einsum('bnd,de->bne', x, w_qkv, precision=hp)     # (B, N, 3*HIDDEN)
    q, k, v = jnp.split(qkv, 3, axis=-1)

    def to_heads(t):
        return t.reshape(B, N, HEADS, HEAD_SIZE).transpose(0, 2, 1, 3)  # (B,h,N,d)

    q, k, v = map(to_heads, (q, k, v))
    q = jax.nn.softmax(q, axis=-1) * SCALE
    k = jax.nn.softmax(k, axis=-2)
    context = jnp.einsum('bhnd,bhne->bhde', k, v, precision=hp)
    out = jnp.einsum('bhde,bhnd->bhne', context, q, precision=hp)
    out = out.transpose(0, 2, 1, 3).reshape(B, N, HIDDEN)
    y = jnp.einsum('bnh,hd->bnd', out, w_out, precision=hp)
    mean = jnp.mean(y, axis=-1, keepdims=True)
    var = jnp.mean((y - mean) ** 2, axis=-1, keepdims=True)
    return (y - mean) * jax.lax.rsqrt(var + LN_EPS) * gamma

# TODO(synk): dropout (eval no-op), optional time-conditioning and the optional
# pre-norm (module defaults: time_cond_dim=None, norm=False -> Identity) are not
# represented in the kernel since the defaults make them identity operations.


# ---------------------------------- main ------------------------------------
if __name__ == "__main__":
    key = jax.random.PRNGKey(0)
    kx, kw1, kw2 = jax.random.split(key, 3)

    x = jax.random.normal(kx, (BATCH, SEQ, DIM), dtype=jnp.float32)
    # Deterministic "Kaiming-ish" init for the two bias-free linears.
    w_qkv = jax.random.normal(kw1, (DIM, 3 * HIDDEN), dtype=jnp.float32) * (DIM ** -0.5)
    w_out = jax.random.normal(kw2, (HIDDEN, DIM), dtype=jnp.float32) * (HIDDEN ** -0.5)
    gamma = jnp.ones((DIM,), dtype=jnp.float32)   # GammaLayerNorm gamma init = 1

    y = linear_attention_block(x, w_qkv, w_out, gamma)
    jax.block_until_ready(y)

    y_ref = _reference(x, w_qkv, w_out, gamma)
    assert y.shape == (BATCH, SEQ, DIM)
    assert jnp.allclose(y, y_ref, rtol=2e-3, atol=1e-3), "mismatch vs reference"

    print("KERNEL_OK")
</pallas_src>

<mosaic_0001>
module attributes {stable_mosaic.version = 11 : i64} {
  func.func @_linear_attn_kernel(%arg0: i32, %arg1: memref<16x32xf32, #tpu.memory_space<vmem>>, %arg2: memref<32x32xf32, #tpu.memory_space<vmem>>, %arg3: memref<32x32xf32, #tpu.memory_space<vmem>>, %arg4: memref<32x32xf32, #tpu.memory_space<vmem>>, %arg5: memref<32x32xf32, #tpu.memory_space<vmem>>, %arg6: memref<1x32xf32, #tpu.memory_space<vmem>>, %arg7: memref<32x32xf32, #tpu.memory_space<vmem>>, %arg8: memref<16x32xf32, #tpu.memory_space<vmem>>) attributes {dimension_semantics = [#tpu.dimension_semantics<arbitrary>], iteration_bounds = array<i64: 1>, scalar_prefetch = 0 : i64, scratch_operands = 0 : i64, tpu.core_type = #tpu.core_type<tc>, window_params = [{pipeline_mode = #tpu.pipeline_mode<synchronous>, transform_indices = @transform_0, window_bounds = array<i64: 16, 32>}, {pipeline_mode = #tpu.pipeline_mode<synchronous>, transform_indices = @transform_1, window_bounds = array<i64: 32, 32>}, {pipeline_mode = #tpu.pipeline_mode<synchronous>, transform_indices = @transform_2, window_bounds = array<i64: 32, 32>}, {pipeline_mode = #tpu.pipeline_mode<synchronous>, transform_indices = @transform_3, window_bounds = array<i64: 32, 32>}, {pipeline_mode = #tpu.pipeline_mode<synchronous>, transform_indices = @transform_4, window_bounds = array<i64: 32, 32>}, {pipeline_mode = #tpu.pipeline_mode<synchronous>, transform_indices = @transform_5, window_bounds = array<i64: 1, 32>}, {pipeline_mode = #tpu.pipeline_mode<synchronous>, transform_indices = @transform_6, window_bounds = array<i64: 32, 32>}, {pipeline_mode = #tpu.pipeline_mode<synchronous>, transform_indices = @transform_7, window_bounds = array<i64: 16, 32>}]} {
    %c0 = arith.constant 0 : index
    %c0_0 = arith.constant 0 : index
    %0 = vector.load %arg1[%c0, %c0_0] : memref<16x32xf32, #tpu.memory_space<vmem>>, vector<16x32xf32>
    %c0_1 = arith.constant 0 : index
    %c0_2 = arith.constant 0 : index
    %1 = vector.load %arg2[%c0_1, %c0_2] : memref<32x32xf32, #tpu.memory_space<vmem>>, vector<32x32xf32>
    %cst = arith.constant dense<0.000000e+00> : vector<16x32xf32>
    %2 = tpu.matmul %0, %1, %cst {dimension_numbers = #tpu.dot_dimension_numbers<[1], [0], [0], [1], [0, 0, 1, 1], [], []>} : vector<16x32xf32>, vector<32x32xf32>, vector<16x32xf32> -> vector<16x32xf32>
    %c0_3 = arith.constant 0 : index
    %c0_4 = arith.constant 0 : index
    %3 = vector.load %arg3[%c0_3, %c0_4] : memref<32x32xf32, #tpu.memory_space<vmem>>, vector<32x32xf32>
    %cst_5 = arith.constant dense<0.000000e+00> : vector<16x32xf32>
    %4 = tpu.matmul %0, %3, %cst_5 {dimension_numbers = #tpu.dot_dimension_numbers<[1], [0], [0], [1], [0, 0, 1, 1], [], []>} : vector<16x32xf32>, vector<32x32xf32>, vector<16x32xf32> -> vector<16x32xf32>
    %c0_6 = arith.constant 0 : index
    %c0_7 = arith.constant 0 : index
    %5 = vector.load %arg4[%c0_6, %c0_7] : memref<32x32xf32, #tpu.memory_space<vmem>>, vector<32x32xf32>
    %cst_8 = arith.constant dense<0.000000e+00> : vector<16x32xf32>
    %6 = tpu.matmul %0, %5, %cst_8 {dimension_numbers = #tpu.dot_dimension_numbers<[1], [0], [0], [1], [0, 0, 1, 1], [], []>} : vector<16x32xf32>, vector<32x32xf32>, vector<16x32xf32> -> vector<16x32xf32>
    %c0_9 = arith.constant 0 : index
    %c0_10 = arith.constant 0 : index
    %7 = vector.load %arg7[%c0_9, %c0_10] : memref<32x32xf32, #tpu.memory_space<vmem>>, vector<32x32xf32>
    %cst_11 = arith.constant 0.353553385 : f32
    %8 = vector.broadcast %cst_11 : f32 to vector<32x32xf32>
    %9 = arith.mulf %7, %8 : vector<32x32xf32>
    %10 = vector.extract_strided_slice %2 {offsets = [0, 0], sizes = [8, 32], strides = [1, 1]} : vector<16x32xf32> to vector<8x32xf32>
    %11 = vector.extract_strided_slice %4 {offsets = [0, 0], sizes = [8, 32], strides = [1, 1]} : vector<16x32xf32> to vector<8x32xf32>
    %12 = vector.extract_strided_slice %6 {offsets = [0, 0], sizes = [8, 32], strides = [1, 1]} : vector<16x32xf32> to vector<8x32xf32>
    %cst_12 = arith.constant dense<0xFF800000> : vector<8xf32>
    %13 = vector.multi_reduction <maximumf>, %10, %cst_12 [1] : vector<8x32xf32> to vector<8xf32>
    %14 = vector.shape_cast %13 : vector<8xf32> to vector<8x1xf32>
    %15 = vector.broadcast %14 : vector<8x1xf32> to vector<8x32xf32>
    %16 = arith.subf %10, %15 : vector<8x32xf32>
    %17 = math.exp %16 : vector<8x32xf32>
    %cst_13 = arith.constant dense<0.000000e+00> : vector<8x32xf32>
    %18 = tpu.matmul %17, %7, %cst_13 {dimension_numbers = #tpu.dot_dimension_numbers<[1], [0], [0], [1], [0, 0, 1, 1], [], []>} : vector<8x32xf32>, vector<32x32xf32>, vector<8x32xf32> -> vector<8x32xf32>
    %19 = arith.divf %17, %18 : vector<8x32xf32>
    %cst_14 = arith.constant dense<0xFF800000> : vector<32xf32>
    %20 = vector.multi_reduction <maximumf>, %11, %cst_14 [0] : vector<8x32xf32> to vector<32xf32>
    %21 = vector.shape_cast %20 : vector<32xf32> to vector<1x32xf32>
    %22 = vector.broadcast %21 : vector<1x32xf32> to vector<8x32xf32>
    %23 = arith.subf %11, %22 : vector<8x32xf32>
    %24 = math.exp %23 : vector<8x32xf32>
    %cst_15 = arith.constant dense<0.000000e+00> : vector<32xf32>
    %25 = vector.multi_reduction <add>, %24, %cst_15 [0] : vector<8x32xf32> to vector<32xf32>
    %26 = vector.shape_cast %25 : vector<32xf32> to vector<1x32xf32>
    %27 = vector.broadcast %26 : vector<1x32xf32> to vector<8x32xf32>
    %28 = arith.divf %24, %27 : vector<8x32xf32>
    %cst_16 = arith.constant dense<0.000000e+00> : vector<32x32xf32>
    %29 = tpu.matmul %28, %12, %cst_16 {dimension_numbers = #tpu.dot_dimension_numbers<[0], [0], [1], [1], [0, 1, 1, 1], [], []>} : vector<8x32xf32>, vector<8x32xf32>, vector<32x32xf32> -> vector<32x32xf32>
    %30 = arith.mulf %29, %9 : vector<32x32xf32>
    %cst_17 = arith.constant dense<0.000000e+00> : vector<8x32xf32>
    %31 = tpu.matmul %19, %30, %cst_17 {dimension_numbers = #tpu.dot_dimension_numbers<[1], [0], [0], [1], [0, 0, 1, 1], [], []>} : vector<8x32xf32>, vector<32x32xf32>, vector<8x32xf32> -> vector<8x32xf32>
    %32 = vector.extract_strided_slice %2 {offsets = [8, 0], sizes = [8, 32], strides = [1, 1]} : vector<16x32xf32> to vector<8x32xf32>
    %33 = vector.extract_strided_slice %4 {offsets = [8, 0], sizes = [8, 32], strides = [1, 1]} : vector<16x32xf32> to vector<8x32xf32>
    %34 = vector.extract_strided_slice %6 {offsets = [8, 0], sizes = [8, 32], strides = [1, 1]} : vector<16x32xf32> to vector<8x32xf32>
    %cst_18 = arith.constant dense<0xFF800000> : vector<8xf32>
    %35 = vector.multi_reduction <maximumf>, %32, %cst_18 [1] : vector<8x32xf32> to vector<8xf32>
    %36 = vector.shape_cast %35 : vector<8xf32> to vector<8x1xf32>
    %37 = vector.broadcast %36 : vector<8x1xf32> to vector<8x32xf32>
    %38 = arith.subf %32, %37 : vector<8x32xf32>
    %39 = math.exp %38 : vector<8x32xf32>
    %cst_19 = arith.constant dense<0.000000e+00> : vector<8x32xf32>
    %40 = tpu.matmul %39, %7, %cst_19 {dimension_numbers = #tpu.dot_dimension_numbers<[1], [0], [0], [1], [0, 0, 1, 1], [], []>} : vector<8x32xf32>, vector<32x32xf32>, vector<8x32xf32> -> vector<8x32xf32>
    %41 = arith.divf %39, %40 : vector<8x32xf32>
    %cst_20 = arith.constant dense<0xFF800000> : vector<32xf32>
    %42 = vector.multi_reduction <maximumf>, %33, %cst_20 [0] : vector<8x32xf32> to vector<32xf32>
    %43 = vector.shape_cast %42 : vector<32xf32> to vector<1x32xf32>
    %44 = vector.broadcast %43 : vector<1x32xf32> to vector<8x32xf32>
    %45 = arith.subf %33, %44 : vector<8x32xf32>
    %46 = math.exp %45 : vector<8x32xf32>
    %cst_21 = arith.constant dense<0.000000e+00> : vector<32xf32>
    %47 = vector.multi_reduction <add>, %46, %cst_21 [0] : vector<8x32xf32> to vector<32xf32>
    %48 = vector.shape_cast %47 : vector<32xf32> to vector<1x32xf32>
    %49 = vector.broadcast %48 : vector<1x32xf32> to vector<8x32xf32>
    %50 = arith.divf %46, %49 : vector<8x32xf32>
    %cst_22 = arith.constant dense<0.000000e+00> : vector<32x32xf32>
    %51 = tpu.matmul %50, %34, %cst_22 {dimension_numbers = #tpu.dot_dimension_numbers<[0], [0], [1], [1], [0, 1, 1, 1], [], []>} : vector<8x32xf32>, vector<8x32xf32>, vector<32x32xf32> -> vector<32x32xf32>
    %52 = arith.mulf %51, %9 : vector<32x32xf32>
    %cst_23 = arith.constant dense<0.000000e+00> : vector<8x32xf32>
    %53 = tpu.matmul %41, %52, %cst_23 {dimension_numbers = #tpu.dot_dimension_numbers<[1], [0], [0], [1], [0, 0, 1, 1], [], []>} : vector<8x32xf32>, vector<32x32xf32>, vector<8x32xf32> -> vector<8x32xf32>
    %54 = tpu.concatenate %31, %53 in 0 : vector<8x32xf32>, vector<8x32xf32> -> vector<16x32xf32>
    %c0_24 = arith.constant 0 : index
    %c0_25 = arith.constant 0 : index
    %55 = vector.load %arg5[%c0_24, %c0_25] : memref<32x32xf32, #tpu.memory_space<vmem>>, vector<32x32xf32>
    %cst_26 = arith.constant dense<0.000000e+00> : vector<16x32xf32>
    %56 = tpu.matmul %54, %55, %cst_26 {dimension_numbers = #tpu.dot_dimension_numbers<[1], [0], [0], [1], [0, 0, 1, 1], [], []>} : vector<16x32xf32>, vector<32x32xf32>, vector<16x32xf32> -> vector<16x32xf32>
    %cst_27 = arith.constant dense<0.000000e+00> : vector<16xf32>
    %57 = vector.multi_reduction <add>, %56, %cst_27 [1] : vector<16x32xf32> to vector<16xf32>
    %58 = vector.shape_cast %57 : vector<16xf32> to vector<16x1xf32>
    %cst_28 = arith.constant 3.125000e-02 : f32
    %59 = vector.broadcast %cst_28 : f32 to vector<16x1xf32>
    %60 = arith.mulf %58, %59 : vector<16x1xf32>
    %61 = vector.broadcast %60 : vector<16x1xf32> to vector<16x32xf32>
    %62 = arith.subf %56, %61 : vector<16x32xf32>
    %63 = arith.mulf %62, %62 : vector<16x32xf32>
    %cst_29 = arith.constant dense<0.000000e+00> : vector<16xf32>
    %64 = vector.multi_reduction <add>, %63, %cst_29 [1] : vector<16x32xf32> to vector<16xf32>
    %65 = vector.shape_cast %64 : vector<16xf32> to vector<16x1xf32>
    %cst_30 = arith.constant 3.125000e-02 : f32
    %66 = vector.broadcast %cst_30 : f32 to vector<16x1xf32>
    %67 = arith.mulf %65, %66 : vector<16x1xf32>
    %cst_31 = arith.constant 9.99999974E-6 : f32
    %68 = vector.broadcast %cst_31 : f32 to vector<16x1xf32>
    %69 = arith.addf %67, %68 : vector<16x1xf32>
    %70 = math.rsqrt %69 : vector<16x1xf32>
    %71 = vector.broadcast %70 : vector<16x1xf32> to vector<16x32xf32>
    %72 = arith.mulf %62, %71 : vector<16x32xf32>
    %c0_32 = arith.constant 0 : index
    %c0_33 = arith.constant 0 : index
    %73 = vector.load %arg6[%c0_32, %c0_33] : memref<1x32xf32, #tpu.memory_space<vmem>>, vector<1x32xf32>
    %74 = vector.broadcast %73 : vector<1x32xf32> to vector<16x32xf32>
    %75 = arith.mulf %72, %74 : vector<16x32xf32>
    %c0_34 = arith.constant 0 : index
    %c0_35 = arith.constant 0 : index
    %76 = vector.load %arg8[%c0_34, %c0_35] : memref<16x32xf32, #tpu.memory_space<vmem>>, vector<16x32xf32>
    tpu.vector_store %arg8[%c0_34, %c0_35], %75 {strides = array<i32>} : memref<16x32xf32, #tpu.memory_space<vmem>>, vector<16x32xf32>,
    return
  }
  func.func @transform_0(%arg0: i32) -> (i32, i32) {
    %c0_i32 = arith.constant 0 : i32
    %c0_i32_0 = arith.constant 0 : i32
    %c0_i32_1 = arith.constant 0 : i32
    return %c0_i32, %c0_i32_0 : i32, i32
  }
  func.func @transform_1(%arg0: i32) -> (i32, i32) {
    %c0_i32 = arith.constant 0 : i32
    %c0_i32_0 = arith.constant 0 : i32
    %c0_i32_1 = arith.constant 0 : i32
    return %c0_i32, %c0_i32_0 : i32, i32
  }
  func.func @transform_2(%arg0: i32) -> (i32, i32) {
    %c0_i32 = arith.constant 0 : i32
    %c0_i32_0 = arith.constant 0 : i32
    %c0_i32_1 = arith.constant 0 : i32
    return %c0_i32, %c0_i32_0 : i32, i32
  }
  func.func @transform_3(%arg0: i32) -> (i32, i32) {
    %c0_i32 = arith.constant 0 : i32
    %c0_i32_0 = arith.constant 0 : i32
    %c0_i32_1 = arith.constant 0 : i32
    return %c0_i32, %c0_i32_0 : i32, i32
  }
  func.func @transform_4(%arg0: i32) -> (i32, i32) {
    %c0_i32 = arith.constant 0 : i32
    %c0_i32_0 = arith.constant 0 : i32
    %c0_i32_1 = arith.constant 0 : i32
    return %c0_i32, %c0_i32_0 : i32, i32
  }
  func.func @transform_5(%arg0: i32) -> (i32, i32) {
    %c0_i32 = arith.constant 0 : i32
    %c0_i32_0 = arith.constant 0 : i32
    %c0_i32_1 = arith.constant 0 : i32
    return %c0_i32, %c0_i32_0 : i32, i32
  }
  func.func @transform_6(%arg0: i32) -> (i32, i32) {
    %c0_i32 = arith.constant 0 : i32
    %c0_i32_0 = arith.constant 0 : i32
    %c0_i32_1 = arith.constant 0 : i32
    return %c0_i32, %c0_i32_0 : i32, i32
  }
  func.func @transform_7(%arg0: i32) -> (i32, i32) {
    %c0_i32 = arith.constant 0 : i32
    %c0_i32_0 = arith.constant 0 : i32
    %c0_i32_1 = arith.constant 0 : i32
    return %c0_i32, %c0_i32_0 : i32, i32
  }
}

</mosaic_0001>

<bundles_post_ra>
// kernel: tpu_custom_call.1
= control target key start
LH: loop header
LB: loop body
LE: loop exit
PB: predicated region body
PF: predicated region fallthrough
CT: control target
= control target key end

     0   :  { %12 = vsyncpa [#allocation3], 0  ;;  %s1060_s0 = inlined_call_operand.hbm [shape: f32[16,32], index: 0, kind: input, shape index: {}]   ;;  %s1061_s1 = inlined_call_operand.hbm [shape: f32[32,32], index: 1, kind: input, shape index: {}]   ;;  %s1062_s2 = inlined_call_operand.hbm [shape: f32[32,32], index: 2, kind: input, shape index: {}]   ;;  %s1063_s3 = inlined_call_operand.hbm [shape: f32[32,32], index: 3, kind: input, shape index: {}]   ;;  %s1064_s4 = inlined_call_operand.hbm [shape: f32[32,32], index: 4, kind: input, shape index: {}]   ;;  %s1065_s5 = inlined_call_operand.vmem [shape: f32[1,32], index: 5, kind: input, shape index: {}]   ;;  %s1066_s6 = inlined_call_operand.hbm [shape: f32[32,32], index: 6, kind: input, shape index: {}]   ;;  %s1067_s7 = inlined_call_operand.hbm [shape: f32[16,32], index: 7, kind: output, shape index: {}]  }
   0x1   :  { %13 = vsyncpa [#allocation6], 0 }
   0x2   :  { %14 = vsyncpa [#allocation9], 0 }
   0x3   :  { %15 = vsyncpa [#allocation12], 0 }
   0x4   :  { %16 = vsyncpa [#allocation4], 0  ;;  %s34_s26 = sshll.u32 %s1061_s1, 4  ;;  %s912_s27 = smov [#allocation5]   ;;  %s35_s26 = int_to_ptr.hbm [resolvable:$true] %s34_s26 }
   0x5   :  { %s36_s28 = sshll.u32 %s912_s27, 4  ;;  %s60_s8 = sshll.u32 %s1063_s3, 4  ;;  %s37_s28 = int_to_ptr.vmem [resolvable:$true] %s36_s28  ;;  %s61_s8 = int_to_ptr.hbm [resolvable:$true] %s60_s8 }
   0x6   :  { %s913_s9 = smov 128   ;;  %s914_s10 = smov 8  }
   0x7   :  { %42 = dma.hbm_to_vmem [thread:$0]  %s35_s26, 512, %s37_s28, [#allocation6], %s913_s9, %s913_s9, %s914_s10  }
   0x8   :  { %s915_s11 = smov [#allocation8]   ;;  %s21_s1 = sshll.u32 %s1060_s0, 4  ;;  %s22_s1 = int_to_ptr.hbm [resolvable:$true] %s21_s1 }
   0x9   :  { %s62_s12 = sshll.u32 %s915_s11, 4  ;;  %s47_s16 = sshll.u32 %s1062_s2, 4  ;;  %s63_s12 = int_to_ptr.vmem [resolvable:$true] %s62_s12  ;;  %s48_s16 = int_to_ptr.hbm [resolvable:$true] %s47_s16 }
   0xa   :  { %68 = dma.hbm_to_vmem [thread:$0]  %s61_s8, 512, %s63_s12, [#allocation9], %s913_s9, %s913_s9, %s914_s10  }
   0xb   :  { %s916_s17 = smov [#allocation2]   ;;  %s917_s19 = smov [#allocation7]  }
   0xc   :  { %s23_s18 = sshll.u32 %s916_s17, 4  ;;  %s49_s0 = sshll.u32 %s917_s19, 4  ;;  %s24_s18 = int_to_ptr.vmem [resolvable:$true] %s23_s18  ;;  %s50_s0 = int_to_ptr.vmem [resolvable:$true] %s49_s0 }
   0xd   :  { %29 = dma.hbm_to_vmem [thread:$0]  %s22_s1, 256, %s24_s18, [#allocation3], %s913_s9, %s913_s9, %s914_s10  }
   0xe   :  { %s73_s22 = sshll.u32 %s1064_s4, 4  ;;  %s88_s24 = sshll.u32 %s1066_s6, 4  ;;  %s74_s22 = int_to_ptr.hbm [resolvable:$true] %s73_s22  ;;  %s89_s24 = int_to_ptr.hbm [resolvable:$true] %s88_s24 }
   0xf   :  { %55 = dma.hbm_to_vmem [thread:$0]  %s48_s16, 512, %s50_s0, [#allocation6], %s913_s9, %s913_s9, %s914_s10  }
  0x10   :  { %s918_s25 = smov [#allocation10]   ;;  %s919_s27 = smov [#allocation11]  }
  0x11   :  { %s75_s26 = sshll.u32 %s918_s25, 4  ;;  %s90_s4 = sshll.u32 %s919_s27, 4  ;;  %s76_s26 = int_to_ptr.vmem [resolvable:$true] %s75_s26  ;;  %s91_s4 = int_to_ptr.vmem [resolvable:$true] %s90_s4 }
  0x12   :  { %81 = dma.hbm_to_vmem [thread:$0]  %s74_s22, 512, %s76_s26, [#allocation9], %s913_s9, %s913_s9, %s914_s10  }
  0x13   :  { %96 = dma.hbm_to_vmem [thread:$0]  %s89_s24, 512, %s91_s4, [#allocation12], %s913_s9, %s913_s9, %s914_s10  }
  0x14   :  { %902 = dma.done.wait [#allocation3], 256  }
  0x15   :  { %903 = vsyncadd [#allocation3], 4294967040 }
  0x16   :  { %904 = dma.done.wait [#allocation6], 1024  }
  0x17   :  { %905 = vsyncadd [#allocation6], 4294966272 }
  0x18   :  { %906 = dma.done.wait [#allocation9], 1024  }
  0x19   :  { %907 = vsyncadd [#allocation9], 4294966272 }
  0x1a   :  { %908 = dma.done.wait [#allocation12], 512  }
  0x1b   :  { %909 = vsyncadd [#allocation12], 4294966784  ;;  %v126_v0 = vld [vmem:[#allocation5 + $0x18] sm:$0xff]  ;;  %v125_v2 = vld [vmem:[#allocation5 + $0x10] sm:$0xff]  ;;  %vm127_vm0 = vcmask 261120   ;;  %vm327_vm9 = vcmask 64512  }
  0x1c   :  { %v160_v1 = vld [vmem:[#allocation7 + $0x18] sm:$0xff]  ;;  %146 = vmatpush.msra.mxu0 %v126_v0  ;;  %v159_v3 = vld [vmem:[#allocation7 + $0x10] sm:$0xff]  ;;  %v124_v4 = vld [vmem:[#allocation5 + $0x8] sm:$0xff]  ;;  %s663_s11 = sshll.u32 %s1067_s7, 4  ;;  %s664_s11 = int_to_ptr.hbm [resolvable:$true] %s663_s11 }
  0x1d   :  { %173 = vmatpush.msra.mxu1 %v160_v1  ;;  %v158_v5 = vld [vmem:[#allocation7 + $0x8] sm:$0xff]  ;;  %v123_v6 = vld [vmem:[#allocation5] sm:$0xff]  ;;  %v997_v8 = vld [vmem:[#allocation2] sm:$0xff] }
  0x1e   :  { %147 = vmatpush.msra.mxu0 %v125_v2  ;;  %v157_v7 = vld [vmem:[#allocation7] sm:$0xff]  ;;  %v1003_v9 = vld [vmem:[#allocation2 + $0x8] sm:$0xff]  ;;  %v186_v62 = vld [vmem:[#allocation8 + $0x10] sm:$0xff] }
  0x1f   :  { %174 = vmatpush.msra.mxu1 %v159_v3  ;;  %v187_v36 = vld [vmem:[#allocation8 + $0x18] sm:$0xff]  ;;  %v185_v63 = vld [vmem:[#allocation8 + $0x8] sm:$0xff]  ;;  %v184_v0 = vld [vmem:[#allocation8] sm:$0xff] }
  0x20   :  { %148 = vmatpush.msra.mxu0 %v124_v4  ;;  %699 = vmatpush.msra.mxu2 %v187_v36 }
  0x21   :  { %175 = vmatpush.msra.mxu1 %v158_v5 }
  0x22   :  { %149 = vmatpush.msra.mxu0 %v123_v6  ;;  %700 = vmatpush.msra.mxu2 %v186_v62 }
  0x23   :  { %176 = vmatpush.msra.mxu1 %v157_v7  ;;  %679 = vmatmul.msk.f32.vlgmr.msra.gmra.mxu0 %vm127_vm0, %v997_v8 }
  0x24   :  { %681 = vmatmul.msk.f32.vlgmr.msra.gmra.mxu1 %vm127_vm0, %v997_v8  ;;  %200 = vmatpush.msrb.mxu0 %v187_v36 }
  0x25   :  { %701 = vmatpush.msra.mxu2 %v185_v63 }
  0x26   :  { %201 = vmatpush.msrb.mxu0 %v186_v62  ;;  %v573_v62 = vld [vmem:[#allocation10 + $0x8] sm:$0xff] }
  0x27   :  { %702 = vmatpush.msra.mxu2 %v184_v0 }
  0x28   :  { %202 = vmatpush.msrb.mxu0 %v185_v63  ;;  %684 = vmatmul.msk.f32.vlgmr.msra.gmra.mxu2 %vm127_vm0, %v1003_v9 }
  0x2a   :  { %203 = vmatpush.msrb.mxu0 %v184_v0 }
  0x2b   :  { %680 = vmatmul.msk.f32.gmra.mxu0 %vm127_vm0, %v1003_v9 }
  0x2c   :  { %682 = vmatmul.msk.f32.gmra.mxu1 %vm127_vm0, %v1003_v9  ;;  %v212_v9 = vld [vmem:[#allocation11 + $0x8] sm:$0xff] }
  0x33   :  { %683 = vmatmul.msk.f32.vlgmr.msrb.gmra.mxu0 %vm127_vm0, %v997_v8  ;;  %v213_v8 = vld [vmem:[#allocation11 + $0x10] sm:$0xff] }
  0xa0   :  { %v1009_v10 = vpop.f32.mrf.mxu0 }
  0xa1   :  { %v178_v11 = vpop.f32.mrf.mxu1  ;;  %v219_v13 = vsel %vm127_vm0, %v1009_v10, -inf }
  0xa2   :  { %v263_v12 = vsel %vm127_vm0, %v178_v11, -inf  ;;  %220 = vmax.xlane.f32.xlu0 %v219_v13 }
  0xa3   :  { %v264_v14 = vrot.slane %v263_v12, 4 }
  0xa5   :  { %v265_v15 = vmax.f32 %v263_v12, %v264_v14 }
  0xa7   :  { %v266_v16 = vrot.slane %v265_v15, 2 }
  0xa8   :  { %v1014_v18 = vpop.f32.mrf.mxu0 }
  0xa9   :  { %v267_v17 = vmax.f32 %v265_v15, %v266_v16  ;;  %v181_v19 = vpop.f32.mrf.mxu1  ;;  %v396_v21 = vsel %vm127_vm0, %v1014_v18, -inf  ;;  %v214_v15 = vld [vmem:[#allocation11 + $0x18] sm:$0xff]  ;;  %v211_v16 = vld [vmem:[#allocation11] sm:$0xff] }
  0xaa   :  { %v440_v20 = vsel %vm127_vm0, %v181_v19, -inf  ;;  %397 = vmax.xlane.f32.xlu0 %v396_v21  ;;  %240 = vmatpush.msra.mxu3 %v214_v15 }
  0xab   :  { %v268_v22 = vrot.slane %v267_v17, 1  ;;  %v441_v23 = vrot.slane %v440_v20, 4  ;;  %417 = vmatpush.msrb.mxu1 %v214_v15 }
  0xac   :  { %241 = vmatpush.msra.mxu3 %v213_v8 }
  0xad   :  { %v269_v24 = vmax.f32 %v267_v17, %v268_v22  ;;  %v442_v25 = vmax.f32 %v440_v20, %v441_v23  ;;  %418 = vmatpush.msrb.mxu1 %v213_v8 }
  0xae   :  { %242 = vmatpush.msra.mxu3 %v212_v9 }
  0xaf   :  { %v270_v26 = vsub.f32 %v178_v11, %v269_v24  ;;  %v443_v27 = vrot.slane %v442_v25, 2  ;;  %419 = vmatpush.msrb.mxu1 %v212_v9 }
  0xb0   :  { %243 = vmatpush.msra.mxu3 %v211_v16 }
  0xb1   :  { %v271_v28 = vmul.f32 1.442695, %v270_v26  ;;  %v444_v29 = vmax.f32 %v442_v25, %v443_v27  ;;  %420 = vmatpush.msrb.mxu1 %v211_v16  ;;  %v205_v26 = vpop.f32.mrf.mxu0  ;;  %v208_v27 = vpop.f32.mrf.mxu2 }
  0xb2   :  { %355 = vmatpush.msrb.mxu3 %v205_v26  ;;  %531 = vmatpush.msrb.mxu2 %v208_v27 }
  0xb3   :  { %714 = vpow2.f32 %v271_v28  ;;  %v445_v30 = vrot.slane %v444_v29, 1 }
  0xb5   :  { %v446_v31 = vmax.f32 %v444_v29, %v445_v30 }
  0xb7   :  { %v447_v32 = vsub.f32 %v181_v19, %v446_v31 }
  0xb9   :  { %v715_v33 = vpop.eup %714  ;;  %v448_v34 = vmul.f32 1.442695, %v447_v32 }
  0xba   :  { %v273_v35 = vsel %vm127_vm0, %v715_v33, 0.0 }
  0xbb   :  { %v274_v37 = vrot.slane %v273_v35, 4  ;;  %716 = vpow2.f32 %v448_v34 }
  0xbd   :  { %v275_v38 = vadd.f32 %v274_v37, %v273_v35 }
  0xbf   :  { %v276_v39 = vrot.slane %v275_v38, 2 }
  0xc1   :  { %v717_v40 = vpop.eup %716  ;;  %v277_v41 = vadd.f32 %v276_v39, %v275_v38 }
  0xc2   :  { %v450_v42 = vsel %vm127_vm0, %v717_v40, 0.0 }
  0xc3   :  { %v278_v43 = vrot.slane %v277_v41, 1  ;;  %v451_v44 = vrot.slane %v450_v42, 4 }
  0xc5   :  { %v279_v45 = vadd.f32 %v278_v43, %v277_v41  ;;  %v452_v46 = vadd.f32 %v451_v44, %v450_v42  ;;  %v218_v42 = vmul.f32 0.35355338, %v214_v15 }
  0xc7   :  { %718 = vrcp.f32 %v279_v45  ;;  %v453_v47 = vrot.slane %v452_v46, 2  ;;  %v291_v53 = vand.u32 2147483648, %v279_v45  ;;  %v289_v55 = vand.u32 2147483647, %v279_v45 }
  0xc8   :  { %vm285_vm2 = vweird.f32 %v279_v45 }
  0xc9   :  { %v454_v49 = vadd.f32 %v453_v47, %v452_v46  ;;  %v292_v58 = vor.u32 1.1754944e-38, %v291_v53  ;;  %vm290_vm4 = vcmp.eq.f32.partialorder %v289_v55, 8.507059e+37 }
  0xcb   :  { %v455_v52 = vrot.slane %v454_v49, 1 }
  0xcd   :  { %v719_v48 = vpop.eup %718  ;;  %v456_v57 = vadd.f32 %v455_v52, %v454_v49  ;;  %v215_v52 = vmul.f32 0.35355338, %v211_v16 }
  0xce   :  { %v281_v50 = vmul.f32 %v719_v48, %v279_v45  ;;  %vm286_vm1 = vweird.f32 %v719_v48  ;;  %v217_v45 = vmul.f32 0.35355338, %v213_v8 }
  0xcf   :  { %vm287_vm3 = vmor %vm285_vm2, %vm286_vm1  ;;  %720 = vrcp.f32 %v456_v57  ;;  %v468_v6 = vand.u32 2147483648, %v456_v57  ;;  %vm462_vm6 = vweird.f32 %v456_v57  ;;  %v466_v7 = vand.u32 2147483647, %v456_v57 }
  0xd0   :  { %v282_v51 = vsub.f32 1.0, %v281_v50 }
  0xd1   :  { %v469_v12 = vor.u32 1.1754944e-38, %v468_v6  ;;  %vm467_vm8 = vcmp.eq.f32.partialorder %v466_v7, 8.507059e+37 }
  0xd2   :  { %v283_v54 = vmul.f32 %v719_v48, %v282_v51 }
  0xd4   :  { %v284_v56 = vadd.f32 %v719_v48, %v283_v54 }
  0xd5   :  { %v721_v1 = vpop.eup %720 }
  0xd6   :  { %v288_v59 = vsel %vm287_vm3, %v719_v48, %v284_v56  ;;  %v458_v2 = vmul.f32 %v721_v1, %v456_v57  ;;  %vm463_vm5 = vweird.f32 %v721_v1  ;;  %v216_v48 = vmul.f32 0.35355338, %v212_v9 }
  0xd7   :  { %v293_v60 = vsel %vm290_vm4, %v292_v58, %v288_v59  ;;  %vm464_vm7 = vmor %vm462_vm6, %vm463_vm5 }
  0xd8   :  { %v294_v61 = vmul.f32 %v715_v33, %v293_v60  ;;  %v459_v3 = vsub.f32 1.0, %v458_v2  ;;  %v575_v60 = vld [vmem:[#allocation10 + $0x18] sm:$0xff] }
  0xd9   :  { %594 = vmatpush.msra.mxu1 %v575_v60 }
  0xda   :  { %295 = vxpose.xlu1.b32.start.end [1/1] (short) (narrow) %v294_v61, 32  ;;  %v460_v4 = vmul.f32 %v721_v1, %v459_v3  ;;  %v574_v61 = vld [vmem:[#allocation10 + $0x10] sm:$0xff] }
  0xdb   :  { %595 = vmatpush.msra.mxu1 %v574_v61 }
  0xdc   :  { %v461_v5 = vadd.f32 %v721_v1, %v460_v4 }
  0xdd   :  { %596 = vmatpush.msra.mxu1 %v573_v62 }
  0xde   :  { %v465_v11 = vsel %vm464_vm7, %v721_v1, %v461_v5 }
  0xdf   :  { %v470_v13 = vsel %vm467_vm8, %v469_v12, %v465_v11 }
  0xe0   :  { %v471_v14 = vmul.f32 %v717_v40, %v470_v13 }
  0xfa   :  { %472 = vxpose.xlu1.b32.start.end [1/1] (short) (narrow) %v471_v14, 32 }
 0x115   :  { %v221_v17 = vpop.xlane.xlu0 %220 }
 0x116   :  { %v222_v19 = vsub.f32 %v1009_v10, %v221_v17 }
 0x118   :  { %v223_v20 = vmul.f32 1.442695, %v222_v19  ;;  %v572_v19 = vld [vmem:[#allocation10] sm:$0xff] }
 0x119   :  { %597 = vmatpush.msra.mxu1 %v572_v19 }
 0x11a   :  { %722 = vpow2.f32 %v223_v20 }
 0x11d   :  { %v398_v21 = vpop.xlane.xlu0 %397 }
 0x11e   :  { %v399_v22 = vsub.f32 %v1014_v18, %v398_v21 }
 0x120   :  { %v723_v23 = vpop.eup %722  ;;  %v400_v24 = vmul.f32 1.442695, %v399_v22 }
 0x121   :  { %685 = vmatmul.msk.f32.vlgmr.msra.gmra.mxu3 %vm127_vm0, %v723_v23 }
 0x122   :  { %724 = vpow2.f32 %v400_v24 }
 0x128   :  { %v1028_v25 = vpop.eup %724 }
 0x129   :  { %691 = vmatmul.msk.f32.vlgmr.msrb.gmra.mxu1 %vm127_vm0, %v1028_v25 }
 0x17e   :  { %v311_v10 = vpop.trf.xlu1 }
 0x17f   :  { %686 = vmatmul.msk.f32.vlgmr.msrb.gmra.mxu3 %vm327_vm9, %v311_v10 }
 0x186   :  { %v312_v28 = vpop.trf.xlu1 }
 0x187   :  { %687 = vmatmul.msk.f32.gmra.mxu3 %vm327_vm9, %v312_v28 }
 0x18e   :  { %v313_v18 = vpop.trf.xlu1 }
 0x18f   :  { %688 = vmatmul.msk.f32.gmra.mxu3 %vm327_vm9, %v313_v18 }
 0x196   :  { %v314_v29 = vpop.trf.xlu1 }
 0x197   :  { %689 = vmatmul.msk.f32.gmra.mxu3 %vm327_vm9, %v314_v29 }
 0x19e   :  { %v488_v30 = vpop.trf.xlu1 }
 0x19f   :  { %692 = vmatmul.msk.f32.vlgmr.msrb.gmra.mxu2 %vm327_vm9, %v488_v30 }
 0x1a4   :  { %v245_v34 = vpop.f32.mrf.mxu3 }
 0x1a5   :  { %726 = vrcp.f32 %v245_v34  ;;  %v259_v44 = vand.u32 2147483648, %v245_v34  ;;  %vm253_vm11 = vweird.f32 %v245_v34  ;;  %v257_v46 = vand.u32 2147483647, %v245_v34 }
 0x1a6   :  { %v489_v31 = vpop.trf.xlu1  ;;  %v422_v56 = vpop.f32.mrf.mxu1 }
 0x1a7   :  { %693 = vmatmul.msk.f32.gmra.mxu2 %vm327_vm9, %v489_v31  ;;  %v260_v51 = vor.u32 1.1754944e-38, %v259_v44  ;;  %vm258_vm13 = vcmp.eq.f32.partialorder %v257_v46, 8.507059e+37  ;;  %728 = vrcp.f32 %v422_v56  ;;  %vm430_vm14 = vweird.f32 %v422_v56 }
 0x1a8   :  { %v436_v5 = vand.u32 2147483648, %v422_v56  ;;  %v434_v7 = vand.u32 2147483647, %v422_v56 }
 0x1aa   :  { %v437_v12 = vor.u32 1.1754944e-38, %v436_v5  ;;  %vm435_vm2 = vcmp.eq.f32.partialorder %v434_v7, 8.507059e+37 }
 0x1ab   :  { %v727_v36 = vpop.eup %726 }
 0x1ac   :  { %v249_v38 = vmul.f32 %v727_v36, %v245_v34  ;;  %vm254_vm10 = vweird.f32 %v727_v36 }
 0x1ad   :  { %vm255_vm12 = vmor %vm253_vm11, %vm254_vm10  ;;  %v729_v63 = vpop.eup %728 }
 0x1ae   :  { %v490_v32 = vpop.trf.xlu1  ;;  %v250_v39 = vsub.f32 1.0, %v249_v38  ;;  %v426_v1 = vmul.f32 %v729_v63, %v422_v56  ;;  %vm431_vm15 = vweird.f32 %v729_v63 }
 0x1af   :  { %694 = vmatmul.msk.f32.gmra.mxu2 %vm327_vm9, %v490_v32  ;;  %vm432_vm1 = vmor %vm430_vm14, %vm431_vm15 }
 0x1b0   :  { %v251_v41 = vmul.f32 %v727_v36, %v250_v39  ;;  %v427_v2 = vsub.f32 1.0, %v426_v1 }
 0x1b2   :  { %v252_v43 = vadd.f32 %v727_v36, %v251_v41  ;;  %v428_v4 = vmul.f32 %v729_v63, %v427_v2 }
 0x1b4   :  { %v256_v50 = vsel %vm255_vm12, %v727_v36, %v252_v43  ;;  %v429_v6 = vadd.f32 %v729_v63, %v428_v4  ;;  %v713_v43 = vld [vmem:[%s1065_s5] ss:$0 sm:$0xff]  ;;  %s920_s5 = smov [#allocation13]  }
 0x1b5   :  { %v261_v54 = vsel %vm258_vm13, %v260_v51, %v256_v50  ;;  %s661_s29 = sshll.u32 %s920_s5, 4  ;;  %s662_s29 = int_to_ptr.vmem [resolvable:$true] %s661_s29 }
 0x1b6   :  { %v491_v33 = vpop.trf.xlu1  ;;  %v262_v59 = vmul.f32 %v723_v23, %v261_v54  ;;  %v433_v14 = vsel %vm432_vm1, %v729_v63, %v429_v6 }
 0x1b7   :  { %695 = vmatmul.msk.f32.gmra.mxu2 %vm327_vm9, %v491_v33  ;;  %v438_v8 = vsel %vm435_vm2, %v437_v12, %v433_v14 }
 0x1b8   :  { %v439_v17 = vmul.f32 %v1028_v25, %v438_v8 }
 0x202   :  { %v357_v35 = vpop.f32.mrf.mxu3 }
 0x203   :  { %v369_v57 = vmul.f32 %v357_v35, %v215_v52 }
 0x20a   :  { %v360_v37 = vpop.f32.mrf.mxu3 }
 0x20b   :  { %v370_v55 = vmul.f32 %v360_v37, %v216_v48 }
 0x212   :  { %v363_v40 = vpop.f32.mrf.mxu3 }
 0x213   :  { %v371_v53 = vmul.f32 %v363_v40, %v217_v45 }
 0x21a   :  { %v366_v47 = vpop.f32.mrf.mxu3 }
 0x21b   :  { %v372_v49 = vmul.f32 %v366_v47, %v218_v42 }
 0x21d   :  { %388 = vmatpush.msra.mxu0 %v372_v49 }
 0x21f   :  { %389 = vmatpush.msra.mxu0 %v371_v53 }
 0x221   :  { %390 = vmatpush.msra.mxu0 %v370_v55 }
 0x222   :  { %v533_v58 = vpop.f32.mrf.mxu2 }
 0x223   :  { %391 = vmatpush.msra.mxu0 %v369_v57  ;;  %v545_v16 = vmul.f32 %v533_v58, %v215_v52 }
 0x224   :  { %690 = vmatmul.msk.f32.vlgmr.msra.gmra.mxu0 %vm127_vm0, %v262_v59 }
 0x22a   :  { %v536_v0 = vpop.f32.mrf.mxu2 }
 0x22b   :  { %v546_v9 = vmul.f32 %v536_v0, %v216_v48 }
 0x232   :  { %v539_v3 = vpop.f32.mrf.mxu2 }
 0x233   :  { %v547_v15 = vmul.f32 %v539_v3, %v217_v45 }
 0x23a   :  { %v542_v11 = vpop.f32.mrf.mxu2 }
 0x23b   :  { %v548_v13 = vmul.f32 %v542_v11, %v218_v42 }
 0x23d   :  { %564 = vmatpush.msrb.mxu0 %v548_v13 }
 0x23f   :  { %565 = vmatpush.msrb.mxu0 %v547_v15 }
 0x241   :  { %566 = vmatpush.msrb.mxu0 %v546_v9 }
 0x243   :  { %567 = vmatpush.msrb.mxu0 %v545_v16 }
 0x244   :  { %696 = vmatmul.msk.f32.vlgmr.msrb.gmra.mxu0 %vm127_vm0, %v439_v17 }
 0x2a1   :  { %v393_v20 = vpop.f32.mrf.mxu0 }
 0x2a2   :  { %697 = vmatmul.msk.f32.vlgmr.msra.gmra.mxu1 %vm127_vm0, %v393_v20 }
 0x2c1   :  { %v569_v21 = vpop.f32.mrf.mxu0 }
 0x2c2   :  { %698 = vmatmul.msk.f32.gmra.mxu1 %vm127_vm0, %v569_v21 }
 0x31f   :  { %v599_v22 = vpop.f32.mrf.mxu1 }
 0x320   :  { %v605_v23 = vsel %vm127_vm0, %v599_v22, 0.0 }
 0x321   :  { %606 = vadd.xlane.f32.xlu2 %v605_v23 }
 0x33f   :  { %v602_v24 = vpop.f32.mrf.mxu1 }
 0x340   :  { %v608_v26 = vsel %vm127_vm0, %v602_v24, 0.0 }
 0x341   :  { %609 = vadd.xlane.f32.xlu2 %v608_v26 }
 0x394   :  { %v607_v25 = vpop.xlane.xlu2 %606 }
 0x395   :  { %v611_v27 = vmul.f32 0.03125, %v607_v25 }
 0x397   :  { %v613_v10 = vsub.f32 %v599_v22, %v611_v27 }
 0x399   :  { %v615_v28 = vmul.f32 %v613_v10, %v613_v10 }
 0x39b   :  { %v617_v18 = vsel %vm127_vm0, %v615_v28, 0.0 }
 0x39c   :  { %618 = vadd.xlane.f32.xlu0 %v617_v18 }
 0x3b4   :  { %v610_v29 = vpop.xlane.xlu2 %609 }
 0x3b5   :  { %v612_v30 = vmul.f32 0.03125, %v610_v29 }
 0x3b7   :  { %v614_v31 = vsub.f32 %v602_v24, %v612_v30 }
 0x3b9   :  { %v616_v32 = vmul.f32 %v614_v31, %v614_v31 }
 0x3bb   :  { %v620_v33 = vsel %vm127_vm0, %v616_v32, 0.0 }
 0x3bc   :  { %621 = vadd.xlane.f32.xlu2 %v620_v33 }
 0x40f   :  { %v619_v34 = vpop.xlane.xlu0 %618 }
 0x410   :  { %v623_v35 = vmul.f32 0.03125, %v619_v34 }
 0x412   :  { %v625_v36 = vadd.f32 1e-05, %v623_v35 }
 0x414   :  { %730 = vrsqrt.f32 %v625_v36  ;;  %vm633_vm4 = vweird.f32 %v625_v36 }
 0x41a   :  { %v731_v37 = vpop.eup %730 }
 0x41b   :  { %v628_v38 = vmul.f32 %v731_v37, %v625_v36  ;;  %vm634_vm3 = vweird.f32 %v731_v37 }
 0x41c   :  { %vm635_vm5 = vmor %vm633_vm4, %vm634_vm3 }
 0x41d   :  { %v629_v39 = vmul.f32 %v731_v37, %v628_v38 }
 0x41f   :  { %v630_v40 = vmul.f32 0.5, %v629_v39 }
 0x421   :  { %v631_v41 = vsub.f32 1.5, %v630_v40 }
 0x423   :  { %v632_v42 = vmul.f32 %v731_v37, %v631_v41 }
 0x425   :  { %v636_v44 = vsel %vm635_vm5, %v731_v37, %v632_v42 }
 0x426   :  { %v647_v45 = vmul.f32 %v636_v44, %v613_v10 }
 0x428   :  { %v653_v46 = vmul.f32 %v713_v43, %v647_v45 }
 0x42a   :  { %655 = vst.msk [vmem:[#allocation13] sm:$0xff] %vm127_vm0, %v653_v46 }
 0x42f   :  { %v622_v47 = vpop.xlane.xlu2 %621 }
 0x430   :  { %v624_v48 = vmul.f32 0.03125, %v622_v47 }
 0x432   :  { %v626_v49 = vadd.f32 1e-05, %v624_v48 }
 0x434   :  { %732 = vrsqrt.f32 %v626_v49  ;;  %vm643_vm7 = vweird.f32 %v626_v49 }
 0x43a   :  { %v733_v50 = vpop.eup %732 }
 0x43b   :  { %v638_v51 = vmul.f32 %v733_v50, %v626_v49  ;;  %vm644_vm6 = vweird.f32 %v733_v50 }
 0x43c   :  { %vm645_vm8 = vmor %vm643_vm7, %vm644_vm6 }
 0x43d   :  { %v639_v52 = vmul.f32 %v733_v50, %v638_v51 }
 0x43f   :  { %v640_v53 = vmul.f32 0.5, %v639_v52 }
 0x441   :  { %v641_v54 = vsub.f32 1.5, %v640_v53 }
 0x443   :  { %v642_v55 = vmul.f32 %v733_v50, %v641_v54 }
 0x445   :  { %v646_v56 = vsel %vm645_vm8, %v733_v50, %v642_v55 }
 0x446   :  { %v648_v57 = vmul.f32 %v646_v56, %v614_v31 }
 0x448   :  { %v654_v58 = vmul.f32 %v713_v43, %v648_v57 }
 0x44a   :  { %656 = vst.msk [vmem:[#allocation13 + $0x8] sm:$0xff] %vm127_vm0, %v654_v58 }
 0x44b   :  { %669 = dma.vmem_to_hbm [thread:$0]  %s662_s29, 256, %s664_s11, [#allocation4], %s913_s9, %s913_s9, %s914_s10  }
 0x44c   :  { %910 = dma.done.wait [#allocation4], 256  }
 0x44d   :  { %911 = vsyncadd [#allocation4], 4294967040 }
 0x44e   :  { %674 = vsyncpa [#allocation3], 1 }
 0x44f   :  { %675 = vsyncpa [#allocation6], 1 }
 0x450   :  { %676 = vsyncpa [#allocation9], 1 }
 0x451   :  { %677 = vsyncpa [#allocation12], 1 }
 0x452   :  { %678 = vsyncpa [#allocation4], 1 }

</bundles_post_ra>
